<compile_context>
chip_gen: v7x
topology: tpu7x:2x2x1
jax: 0.10.0
libtpu: 0.0.40
codegen_flags: <defaults>
</compile_context>

<pallas_src>
import jax
import jax.numpy as jnp
from jax import lax
from jax.experimental import pallas as pl
from jax.experimental.pallas import tpu as pltpu


def _round_up(x, m):
    return (x + m - 1) // m * m


def _sublane_multiple(dtype):
    # 8 for 4-byte, 16 for 2-byte, 32 for 1-byte element types.
    return max(8, 32 // jnp.dtype(dtype).itemsize)


def _fused_embed_kernel(gid_ref, pid_ref, table_ref, out_ref):
    """One grid step: produce one (tb, D) block of encoder_input.

    gid_ref:   VMEM (tb, 1) int32 -- combined-table row of the embedding
                                     (const_embed / c_embed) for each token.
    pid_ref:   VMEM (tb, 1) int32 -- combined-table row of the positional
                                     encoding for each token.
    table_ref: VMEM (Vp, D)       -- [const_table; c_table; pos_table] rows,
                                     zero-padded to Vp; index_map is constant,
                                     so the table stays resident in VMEM.
    out_ref:   VMEM (tb, D)       -- encoder_input block
                                     = table[gid] + table[pid].
    """
    tb = gid_ref.shape[0]
    vp = table_ref.shape[0]
    cdt = table_ref.dtype

    iota = lax.broadcasted_iota(jnp.int32, (tb, vp), 1)
    # The two id ranges are disjoint, so summing the two one-hots builds a
    # "two-hot" selection matrix; a single MXU pass then performs both the
    # embedding gather and the positional add.
    sel = (iota == gid_ref[...]).astype(cdt) + (iota == pid_ref[...]).astype(cdt)
    acc = jnp.dot(sel, table_ref[...], preferred_element_type=jnp.float32)
    out_ref[...] = acc.astype(out_ref.dtype)


def cmd_encoder_embed_frontend(command, c_table, const_table, pos_table, *,
                               tb=128, vmem_limit_bytes=32 * 1024 * 1024):
    """CMDEncoder embedding front-end (eval mode, dropout = identity).

    command:     (B, S) integer command ids over n_commands
    c_table:     (n_commands, D) command-embedding table
    const_table: (code_len, D)   constant-code embedding table
    pos_table:   (>= code_len+S, D) positional-encoding table

    Returns encoder_input of shape (code_len + S, B, D):
        cat([const_embed(arange(code_len)) repeated over B,
             c_embed(command).transpose(0, 1)], dim=0)
        + pos_embed(arange(code_len + S))[:, None, :]
    """
    bs, seq = command.shape
    code_len, d_model = const_table.shape
    n_commands = c_table.shape[0]
    total_len = code_len + seq
    assert pos_table.shape[0] >= total_len and pos_table.shape[1] == d_model
    assert c_table.shape[1] == d_model
    out_dtype = c_table.dtype

    # ---- combined VMEM-resident table: [const ; cmd ; pos] rows -------------
    big_table = jnp.concatenate(
        [const_table, c_table, pos_table[:total_len]], axis=0)
    v_total = big_table.shape[0]
    vp = _round_up(v_total, 128)               # lane-align the vocab axis
    if vp != v_total:
        big_table = jnp.pad(big_table, ((0, vp - v_total), (0, 0)))

    cmd_off = code_len
    pos_off = code_len + n_commands

    # ---- per-token row ids, flattened row-major over (t, b) -----------------
    const_ids = jnp.broadcast_to(
        jnp.arange(code_len, dtype=jnp.int32)[:, None], (code_len, bs))
    cmd_ids = jnp.clip(command.astype(jnp.int32), 0, n_commands - 1).T + cmd_off
    gather_ids = jnp.concatenate([const_ids, cmd_ids], axis=0).reshape(-1)
    pos_ids = jnp.broadcast_to(
        jnp.arange(total_len, dtype=jnp.int32)[:, None] + pos_off,
        (total_len, bs)).reshape(-1)

    n_tokens = total_len * bs
    sub = _sublane_multiple(out_dtype)         # 8 f32 / 16 bf16 / 32 int8
    tb = min(tb, _round_up(n_tokens, sub))
    tb = _round_up(tb, sub)
    n_pad = _round_up(n_tokens, tb)
    if n_pad != n_tokens:                      # padded rows are sliced off below
        gather_ids = jnp.pad(gather_ids, (0, n_pad - n_tokens))
        pos_ids = jnp.pad(pos_ids, (0, n_pad - n_tokens))
    gather_ids = gather_ids.reshape(n_pad, 1)
    pos_ids = pos_ids.reshape(n_pad, 1)

    # ---- VMEM budget check (resident table + double-buffered blocks) --------
    item = jnp.dtype(out_dtype).itemsize
    vmem_needed = (2 * vp * d_model * item          # table (double-buffered)
                   + 2 * tb * d_model * item        # output blocks
                   + 2 * 2 * tb * 128 * 4           # two id inputs (lane-padded)
                   + tb * vp * 4)                   # two-hot intermediate
    assert vmem_needed <= vmem_limit_bytes, (
        f"combined embedding table too large for the VMEM-resident path "
        f"({vmem_needed} > {vmem_limit_bytes} bytes)")
    # TODO(synk): for vocabularies too large to keep resident in VMEM, fall back
    # to a scalar-prefetch row-DMA gather instead of the one-hot MXU gather.

    out = pl.pallas_call(
        _fused_embed_kernel,
        out_shape=jax.ShapeDtypeStruct((n_pad, d_model), out_dtype),
        grid_spec=pltpu.PrefetchScalarGridSpec(
            num_scalar_prefetch=0,
            grid=(n_pad // tb,),
            in_specs=[
                pl.BlockSpec((tb, 1), lambda i: (i, 0)),         # gather ids
                pl.BlockSpec((tb, 1), lambda i: (i, 0)),         # pos ids
                pl.BlockSpec((vp, d_model), lambda i: (0, 0)),   # resident table
            ],
            out_specs=pl.BlockSpec((tb, d_model), lambda i: (i, 0)),
        ),
        compiler_params=pltpu.CompilerParams(
            # Disjoint output blocks, no carried state -> legal to shard across
            # both v7x TensorCores (no effect on single-TC v5e/v6e).
            dimension_semantics=("parallel",),
            vmem_limit_bytes=vmem_limit_bytes,
        ),
    )(gather_ids, pos_ids, big_table)

    return out[:n_tokens].reshape(total_len, bs, d_model)


if __name__ == "__main__":
    # Small shapes consistent with CMDEncoder.forward:
    #   command: (batch, seq) ids over cfg.n_commands, d_model = cfg.d_model,
    #   code_len = 4 constant codes, positional table over max_len + code_len.
    d_model = 128
    n_commands = 64
    code_len = 4
    batch, seq = 2, 8
    total_len = code_len + seq
    max_pos = 32                                     # > total_len, mimics max_len+code_len

    key = jax.random.PRNGKey(0)
    k_cmd, k_c, k_z, k_p = jax.random.split(key, 4)

    command = jax.random.randint(k_cmd, (batch, seq), 0, n_commands, dtype=jnp.int32)
    c_table = jax.random.normal(k_c, (n_commands, d_model), dtype=jnp.float32)
    const_table = jax.random.normal(k_z, (code_len, d_model), dtype=jnp.float32)
    pos_table = jax.random.normal(k_p, (max_pos, d_model), dtype=jnp.float32)

    # --- CMDEncoder embedding front-end via the fused Pallas kernel ---
    encoder_input = cmd_encoder_embed_frontend(command, c_table, const_table, pos_table)
    encoder_input = jax.block_until_ready(encoder_input)

    # --- pure-JAX reference (matches the PyTorch front-end in eval mode) ---
    ref_c = jnp.take(c_table, command, axis=0)                       # (B, S, D)
    ref_emb = jnp.transpose(ref_c, (1, 0, 2))                        # (S, B, D)
    ref_z = jnp.broadcast_to(const_table[:, None, :], (code_len, batch, d_model))
    ref_in = jnp.concatenate([ref_z, ref_emb], axis=0)               # (code_len+S, B, D)
    ref_out = ref_in + pos_table[:total_len][:, None, :]

    assert encoder_input.shape == (total_len, batch, d_model)
    assert jnp.allclose(encoder_input, ref_out, atol=1e-5, rtol=1e-5), \
        "fused embedding front-end mismatch vs reference"

    # TODO(synk): the TransformerEncoder stack (TransformerEncoderLayerImproved is
    # not defined in the spec), the VQ-VAE EMA codebook update, and the down/up
    # nn.Linear projections of CMDEncoder are not translated here; this kernel
    # covers the fused nn.Embedding front-end (Embedder + PositionalEncoding add).

    print("KERNEL_OK")
</pallas_src>

<mosaic_0001>
module attributes {stable_mosaic.version = 11 : i64} {
  func.func @_fused_embed_kernel(%arg0: i32, %arg1: memref<24x1xi32, #tpu.memory_space<vmem>>, %arg2: memref<24x1xi32, #tpu.memory_space<vmem>>, %arg3: memref<128x128xf32, #tpu.memory_space<vmem>>, %arg4: memref<24x128xf32, #tpu.memory_space<vmem>>) attributes {dimension_semantics = [#tpu.dimension_semantics<parallel>], iteration_bounds = array<i64: 1>, scalar_prefetch = 0 : i64, scratch_operands = 0 : i64, tpu.core_type = #tpu.core_type<tc>, window_params = [{transform_indices = @transform_0, window_bounds = array<i64: 24, 1>}, {transform_indices = @transform_1, window_bounds = array<i64: 24, 1>}, {pipeline_mode = #tpu.pipeline_mode<synchronous>, transform_indices = @transform_2, window_bounds = array<i64: 128, 128>}, {transform_indices = @transform_3, window_bounds = array<i64: 24, 128>}]} {
    %0 = tpu.iota {dimensions = array<i32: 1>} : vector<24x128xi32>
    %c0 = arith.constant 0 : index
    %c0_0 = arith.constant 0 : index
    %1 = vector.load %arg1[%c0, %c0_0] : memref<24x1xi32, #tpu.memory_space<vmem>>, vector<24x1xi32>
    %2 = vector.broadcast %1 : vector<24x1xi32> to vector<24x128xi32>
    %3 = arith.cmpi eq, %0, %2 : vector<24x128xi32>
    %4 = arith.extui %3 : vector<24x128xi1> to vector<24x128xi32>
    %5 = arith.sitofp %4 : vector<24x128xi32> to vector<24x128xf32>
    %c0_1 = arith.constant 0 : index
    %c0_2 = arith.constant 0 : index
    %6 = vector.load %arg2[%c0_1, %c0_2] : memref<24x1xi32, #tpu.memory_space<vmem>>, vector<24x1xi32>
    %7 = vector.broadcast %6 : vector<24x1xi32> to vector<24x128xi32>
    %8 = arith.cmpi eq, %0, %7 : vector<24x128xi32>
    %9 = arith.extui %8 : vector<24x128xi1> to vector<24x128xi32>
    %10 = arith.sitofp %9 : vector<24x128xi32> to vector<24x128xf32>
    %11 = arith.addf %5, %10 : vector<24x128xf32>
    %c0_3 = arith.constant 0 : index
    %c0_4 = arith.constant 0 : index
    %12 = vector.load %arg3[%c0_3, %c0_4] : memref<128x128xf32, #tpu.memory_space<vmem>>, vector<128x128xf32>
    %cst = arith.constant dense<0.000000e+00> : vector<24x128xf32>
    %13 = tpu.matmul %11, %12, %cst {dimension_numbers = #tpu.dot_dimension_numbers<[1], [0], [0], [1], [0, 0, 1, 1], [], []>} : vector<24x128xf32>, vector<128x128xf32>, vector<24x128xf32> -> vector<24x128xf32>
    %c0_5 = arith.constant 0 : index
    %c0_6 = arith.constant 0 : index
    %14 = vector.load %arg4[%c0_5, %c0_6] : memref<24x128xf32, #tpu.memory_space<vmem>>, vector<24x128xf32>
    tpu.vector_store %arg4[%c0_5, %c0_6], %13 {strides = array<i32>} : memref<24x128xf32, #tpu.memory_space<vmem>>, vector<24x128xf32>,
    return
  }
  func.func @transform_0(%arg0: i32) -> (i32, i32) {
    %c0_i32 = arith.constant 0 : i32
    %c0_i32_0 = arith.constant 0 : i32
    return %arg0, %c0_i32 : i32, i32
  }
  func.func @transform_1(%arg0: i32) -> (i32, i32) {
    %c0_i32 = arith.constant 0 : i32
    %c0_i32_0 = arith.constant 0 : i32
    return %arg0, %c0_i32 : i32, i32
  }
  func.func @transform_2(%arg0: i32) -> (i32, i32) {
    %c0_i32 = arith.constant 0 : i32
    %c0_i32_0 = arith.constant 0 : i32
    %c0_i32_1 = arith.constant 0 : i32
    return %c0_i32, %c0_i32_0 : i32, i32
  }
  func.func @transform_3(%arg0: i32) -> (i32, i32) {
    %c0_i32 = arith.constant 0 : i32
    %c0_i32_0 = arith.constant 0 : i32
    return %arg0, %c0_i32 : i32, i32
  }
}

</mosaic_0001>

<bundles_post_ra>
// kernel: tpu_custom_call.1
= control target key start
LH: loop header
LB: loop body
LE: loop exit
PB: predicated region body
PF: predicated region fallthrough
CT: control target
= control target key end

     0   :  { %8 = vsyncpa [#allocation3], 0  ;;  %s460_s0 = inlined_call_operand.vmem [shape: s32[24,1], index: 0, kind: input, shape index: {}]   ;;  %s461_s1 = inlined_call_operand.vmem [shape: s32[24,1], index: 1, kind: input, shape index: {}]   ;;  %s462_s2 = inlined_call_operand.hbm [shape: f32[128,128], index: 2, kind: input, shape index: {}]   ;;  %s463_s3 = inlined_call_operand.hbm [shape: f32[24,128], index: 3, kind: output, shape index: {}]  }
   0x1   :  { %9 = vsyncpa [#allocation4], 0  ;;  %s356_s12 = smov [#allocation2]   ;;  %s308_s16 = scalar_lea.hbm %s462_s2, 2048 }
   0x2   :  { %s19_s13 = sshll.u32 %s356_s12, 4  ;;  %p309_p0 = scmp.ne.s32.totalorder %s462_s2, %s308_s16  ;;  %s20_s13 = int_to_ptr.vmem [resolvable:$true] %s19_s13 }
   0x3   :  { %p312_p1 = scmp.lt.u32.totalorder %s308_s16, %s462_s2 }
   0x5   :  { %p314_p2 = pnand %p312_p1, %p309_p0 }
   0x7   :  { %317 = shalt.err (!%p314_p2)
}
   0x8   :  { %s318_s21 = scalar_lea.vmem %s20_s13, 2048  ;;  %p323_p4 = scmp.lt.s32.totalorder %s20_s13, %s20_s13 }
   0x9   :  { %p319_p3 = scmp.ne.s32.totalorder %s20_s13, %s318_s21  ;;  %p324_p5 = scmp.lt.s32.totalorder %s318_s21, %s318_s21 }
   0xb   :  { %p325_p6 = por %p324_p5, %p323_p4 }
   0xd   :  { %p326_p7 = pnand %p325_p6, %p319_p3 }
   0xf   :  { %329 = shalt.err (!%p326_p7)
}
  0x10   :  { %s357_s22 = smov 128   ;;  %s358_s23 = smov 8  }
  0x11   :  { %25 = dma.hbm_to_vmem [thread:$0]  %s462_s2, 2048, %s20_s13, [#allocation3], %s357_s22, %s357_s22, %s358_s23  }
  0x12   :  { %352 = dma.done.wait [#allocation3], 2048  }
  0x13   :  { %353 = vsyncadd [#allocation3], 4294965248  ;;  %v359_v0 = vmov 0   ;;  %v360_v1 = vmov 0.0|0.0   ;;  %v32_v2 = vld [vmem:[%s460_s0 + $0x8] sm:$0xff]  ;;  %v31_v3 = vld [vmem:[%s460_s0] sm:$0xff]  ;;  %v29_v33 = vlaneseq }
  0x14   :  { %307 = vset.pattern.permute.xlu1 %v359_v0  ;;  %306 = vset.pattern.permute.xlu0 %v359_v0  ;;  %v53_v4 = vld [vmem:[%s461_s1 + $0x8] sm:$0xff]  ;;  %v33_v5 = vld [vmem:[%s460_s0 + $0x10] sm:$0xff]  ;;  %v76_v6 = vld [vmem:[#allocation2] sm:$0xff]  ;;  %vm361_vm0 = vmmov 0   ;;  %v362_v16 = vmov 0.0   ;;  %s363_s0 = smov [#allocation5]  }
  0x15   :  { %282 = vmatprep.subr.bf16.mxu1 %v360_v1  ;;  %258 = vmatprep.subr.bf16.mxu0 %v360_v1  ;;  %v77_v7 = vld [vmem:[#allocation2 + $0x8] sm:$0xff]  ;;  %v78_v9 = vld [vmem:[#allocation2 + $0x10] sm:$0xff]  ;;  %v79_v10 = vld [vmem:[#allocation2 + $0x18] sm:$0xff]  ;;  %v30_v34 = vand.u32 127, %v29_v33 }
  0x16   :  { %38 = vperm.xlu0 %306, %v32_v2   ;;  %35 = vperm.xlu1 %307, %v31_v3   ;;  %v259_v8 = vpack.c.bf16 %v77_v7, %v76_v6  ;;  %v52_v11 = vld [vmem:[%s461_s1] sm:$0xff]  ;;  %v54_v12 = vld [vmem:[%s461_s1 + $0x10] sm:$0xff]  ;;  %v262_v13 = vpack.c.bf16 %v79_v10, %v78_v9  ;;  %v81_v15 = vld [vmem:[#allocation2 + $0x28] sm:$0xff]  ;;  %s180_s1 = sshll.u32 %s363_s0, 4  ;;  %s181_s1 = int_to_ptr.vmem [resolvable:$true] %s180_s1 }
  0x17   :  { %v80_v14 = vld [vmem:[#allocation2 + $0x20] sm:$0xff]  ;;  %252 = vmatprep.mubr.msk.f32.mxu1 %vm361_vm0, %v362_v16  ;;  %249 = vmatprep.mubr.msk.f32.mxu0 %vm361_vm0, %v362_v16  ;;  %v82_v18 = vld [vmem:[#allocation2 + $0x30] sm:$0xff]  ;;  %v83_v19 = vld [vmem:[#allocation2 + $0x38] sm:$0xff]  ;;  %s330_s10 = scalar_lea.vmem %s181_s1, 384  ;;  %p335_p9 = scmp.lt.s32.totalorder %s181_s1, %s181_s1 }
  0x18   :  { %290 = vmatpush3.bf16.msra.mxu1 %v259_v8  ;;  %260 = vmatpush3.bf16.msra.mxu0 %v259_v8  ;;  %v265_v17 = vpack.c.bf16 %v81_v15, %v80_v14  ;;  %v268_v20 = vpack.c.bf16 %v83_v19, %v82_v18  ;;  %v84_v21 = vld [vmem:[#allocation2 + $0x40] sm:$0xff]  ;;  %v85_v22 = vld [vmem:[#allocation2 + $0x48] sm:$0xff]  ;;  %v86_v24 = vld [vmem:[#allocation2 + $0x50] sm:$0xff]  ;;  %p331_p8 = scmp.ne.s32.totalorder %s181_s1, %s330_s10  ;;  %p336_p10 = scmp.lt.s32.totalorder %s330_s10, %s330_s10 }
  0x19   :  { %283 = vmatprep.subr.bf16.mxu1 %v360_v1  ;;  %261 = vmatprep.subr.bf16.mxu0 %v360_v1  ;;  %v271_v23 = vpack.c.bf16 %v85_v22, %v84_v21  ;;  %v87_v25 = vld [vmem:[#allocation2 + $0x58] sm:$0xff]  ;;  %v88_v27 = vld [vmem:[#allocation2 + $0x60] sm:$0xff]  ;;  %v89_v28 = vld [vmem:[#allocation2 + $0x68] sm:$0xff] }
  0x1a   :  { %59 = vperm.xlu0 %306, %v53_v4   ;;  %41 = vperm.xlu1 %307, %v33_v5   ;;  %v274_v26 = vpack.c.bf16 %v87_v25, %v86_v24  ;;  %v277_v29 = vpack.c.bf16 %v89_v28, %v88_v27  ;;  %v90_v30 = vld [vmem:[#allocation2 + $0x70] sm:$0xff]  ;;  %v91_v31 = vld [vmem:[#allocation2 + $0x78] sm:$0xff]  ;;  %p337_p11 = por %p336_p10, %p335_p9 }
  0x1b   :  { %v280_v32 = vpack.c.bf16 %v91_v31, %v90_v30 }
  0x1c   :  { %291 = vmatpush3.bf16.msra.mxu1 %v262_v13  ;;  %263 = vmatpush3.bf16.msra.mxu0 %v262_v13  ;;  %p338_p12 = pnand %p337_p11, %p331_p8 }
  0x1d   :  { %284 = vmatprep.subr.bf16.mxu1 %v360_v1  ;;  %264 = vmatprep.subr.bf16.mxu0 %v360_v1 }
  0x1e   :  { %56 = vperm.xlu0 %306, %v52_v11   ;;  %62 = vperm.xlu1 %307, %v54_v12  }
  0x20   :  { %292 = vmatpush3.bf16.msra.mxu1 %v265_v17  ;;  %266 = vmatpush3.bf16.msra.mxu0 %v265_v17 }
  0x21   :  { %285 = vmatprep.subr.bf16.mxu1 %v360_v1  ;;  %267 = vmatprep.subr.bf16.mxu0 %v360_v1 }
  0x24   :  { %293 = vmatpush3.bf16.msra.mxu1 %v268_v20  ;;  %269 = vmatpush3.bf16.msra.mxu0 %v268_v20 }
  0x25   :  { %286 = vmatprep.subr.bf16.mxu1 %v360_v1  ;;  %270 = vmatprep.subr.bf16.mxu0 %v360_v1 }
  0x28   :  { %294 = vmatpush3.bf16.msra.mxu1 %v271_v23  ;;  %272 = vmatpush3.bf16.msra.mxu0 %v271_v23 }
  0x29   :  { %287 = vmatprep.subr.bf16.mxu1 %v360_v1  ;;  %273 = vmatprep.subr.bf16.mxu0 %v360_v1 }
  0x2c   :  { %295 = vmatpush3.bf16.msra.mxu1 %v274_v26  ;;  %275 = vmatpush3.bf16.msra.mxu0 %v274_v26 }
  0x2d   :  { %288 = vmatprep.subr.bf16.mxu1 %v360_v1  ;;  %276 = vmatprep.subr.bf16.mxu0 %v360_v1 }
  0x30   :  { %296 = vmatpush3.bf16.msra.mxu1 %v277_v29  ;;  %278 = vmatpush3.bf16.msra.mxu0 %v277_v29 }
  0x31   :  { %289 = vmatprep.subr.bf16.mxu1 %v360_v1  ;;  %279 = vmatprep.subr.bf16.mxu0 %v360_v1 }
  0x34   :  { %297 = vmatpush3.bf16.msra.mxu1 %v280_v32  ;;  %281 = vmatpush3.bf16.msra.mxu0 %v280_v32 }
  0x95   :  { %v39_v35 = vpop.permute.xlu0 %38  ;;  %v36_v36 = vpop.permute.xlu1 %35 }
  0x96   :  { %vm44_vm1 = vcmp.eq.s32.totalorder %v30_v34, %v39_v35  ;;  %vm43_vm3 = vcmp.eq.s32.totalorder %v30_v34, %v36_v36 }
  0x97   :  { %v193_v39 = vsel %vm44_vm1, 1.0, %v362_v16  ;;  %v192_v44 = vsel %vm43_vm3, 1.0, %v362_v16 }
  0x99   :  { %v60_v37 = vpop.permute.xlu0 %59  ;;  %v42_v38 = vpop.permute.xlu1 %41 }
  0x9a   :  { %vm65_vm2 = vcmp.eq.s32.totalorder %v30_v34, %v60_v37  ;;  %vm45_vm4 = vcmp.eq.s32.totalorder %v30_v34, %v42_v38 }
  0x9b   :  { %v196_v40 = vsel %vm65_vm2, 1.0, %v362_v16  ;;  %v194_v45 = vsel %vm45_vm4, 1.0, %v362_v16 }
  0x9c   :  { %v74_v41 = vadd.f32 %v196_v40, %v193_v39 }
  0x9d   :  { %v57_v42 = vpop.permute.xlu0 %56  ;;  %v63_v43 = vpop.permute.xlu1 %62 }
  0x9e   :  { %vm64_vm5 = vcmp.eq.s32.totalorder %v30_v34, %v57_v42  ;;  %vm66_vm6 = vcmp.eq.s32.totalorder %v30_v34, %v63_v43  ;;  %253 = vmatmul.mubr.f32.vlgmr.msra.gmra.mrb[0].mxu1 %v74_v41 }
  0x9f   :  { %v195_v46 = vsel %vm64_vm5, 1.0, %v362_v16  ;;  %v197_v47 = vsel %vm66_vm6, 1.0, %v362_v16  ;;  %255 = vmatprep.mubr.msk.f32.mxu1 %vm361_vm0, %v362_v16 }
  0xa0   :  { %v73_v48 = vadd.f32 %v195_v46, %v192_v44  ;;  %v75_v49 = vadd.f32 %v197_v47, %v194_v45 }
  0xa2   :  { %250 = vmatmul.mubr.f32.vlgmr.msra.gmra.mrb[0].mxu0 %v73_v48  ;;  %256 = vmatmul.mubr.f32.gmra.mrb[2].mxu1 %v75_v49 }
 0x171   :  { %v163_v50 = vpop.f32.mrb[0].mxu1 }
 0x172   :  { %173 = vst [vmem:[#allocation5 + $0x8] sm:$0xff] %v163_v50  ;;  %v254_v51 = vpop.f32.mrb[1].mxu1 }
 0x175   :  { %v158_v52 = vpop.f32.mrb[0].mxu0  ;;  %v168_v53 = vpop.f32.mrb[2].mxu1 }
 0x176   :  { %172 = vst [vmem:[#allocation5] sm:$0xff] %v158_v52  ;;  %174 = vst [vmem:[#allocation5 + $0x10] sm:$0xff] %v168_v53  ;;  %v251_v54 = vpop.f32.mrb[1].mxu0  ;;  %v257_v55 = vpop.f32.mrb[3].mxu1 }
 0x177   :  { %341 = shalt.err (!%p338_p12)
}
 0x178   :  { %s342_s13 = scalar_lea.hbm %s463_s3, 384 }
 0x179   :  { %p343_p13 = scmp.ne.s32.totalorder %s463_s3, %s342_s13  ;;  %p346_p0 = scmp.lt.u32.totalorder %s342_s13, %s463_s3 }
 0x17b   :  { %p348_p1 = pnand %p346_p0, %p343_p13 }
 0x17d   :  { %351 = shalt.err (!%p348_p1)
}
 0x17e   :  { %186 = dma.vmem_to_hbm [thread:$0]  %s181_s1, 384, %s463_s3, [#allocation4], %s357_s22, %s357_s22, %s358_s23  }
 0x17f   :  { %354 = dma.done.wait [#allocation4], 384  }
 0x180   :  { %355 = vsyncadd [#allocation4], 4294966912 }
 0x181   :  { %190 = vsyncpa [#allocation3], 1 }
 0x182   :  { %191 = vsyncpa [#allocation4], 1 }

</bundles_post_ra>
